<compile_context>
chip_gen: v7x
topology: tpu7x:2x2x1
jax: 0.10.0
libtpu: 0.0.40
codegen_flags: <defaults>
</compile_context>

<pallas_src>
import functools

import jax
import jax.numpy as jnp
from jax.experimental import pallas as pl
from jax.experimental.pallas import tpu as pltpu


def _round_up(x, m):
    return ((x + m - 1) // m) * m


def _physical_vmem_bytes():
    """Per-TensorCore VMEM capacity, with a device_kind-keyed fallback."""
    try:
        v = getattr(pltpu.get_tpu_info(), "vmem_capacity_bytes", None)
        if v:
            return int(v)
    except Exception:
        pass
    kind = ""
    try:
        kind = jax.devices()[0].device_kind.lower()
    except Exception:
        pass
    if "v7" in kind:
        return 64 << 20          # v7x: 64 MiB per TensorCore
    if kind:
        return 128 << 20         # v4 / v5e / v5p / v6e: 128 MiB
    return 64 << 20              # unknown hardware: stay conservative


# ---------------------------------------------------------------------------
# Path 1: VMEM-resident table, vectorized one-hot gather on the MXU.
# ---------------------------------------------------------------------------
def _resident_onehot_kernel(idx_ref, table_ref, out_ref, *, author_dim, highest):
    idx = idx_ref[...]                           # (block_n, 1) int32 VMEM tile
    tbl = table_ref[...]                         # (author_dim, E_pad), resident
    block_n = idx.shape[0]
    a_iota = jax.lax.broadcasted_iota(jnp.int32, (block_n, author_dim), 1)
    onehot = jnp.where(a_iota == idx, 1.0, 0.0).astype(tbl.dtype)
    precision = jax.lax.Precision.HIGHEST if highest else None
    acc = jnp.dot(onehot, tbl, preferred_element_type=jnp.float32,
                  precision=precision)
    out_ref[...] = acc.astype(out_ref.dtype)


# ---------------------------------------------------------------------------
# Path 2: HBM table, blocked + cross-step double-buffered manual row-DMA gather.
# ---------------------------------------------------------------------------
def _dma_gather_kernel(idx_ref, table_ref, out_ref, buf_ref, sem_ref, *, block_n):
    i = pl.program_id(0)
    nsteps = pl.num_programs(0)
    slot = i % 2                                  # which half of buf/sem is "ours"

    def start_row_fetches(step, slot_):
        idx_base = step * block_n
        buf_base = slot_ * block_n

        @pl.loop(0, block_n)
        def _(j):
            row = idx_ref[idx_base + j]
            pltpu.make_async_copy(
                table_ref.at[pl.ds(row, 1), :],
                buf_ref.at[pl.ds(buf_base + j, 1), :],
                sem_ref.at[buf_base + j],
            ).start()

    # Prime the pipeline on the first step.
    @pl.when(i == 0)
    def _():
        start_row_fetches(0, 0)

    # Prefetch the next block's rows into the other buffer half while this
    # block's DMAs are still landing / being consumed.
    @pl.when(i + 1 < nsteps)
    def _():
        start_row_fetches(i + 1, 1 - slot)

    buf_base = slot * block_n

    # Wait for this block's row DMAs (sems were signaled by the copies above
    # or by the previous grid step's prefetch).
    @pl.loop(0, block_n)
    def _(j):
        pltpu.make_async_copy(
            table_ref.at[pl.ds(0, 1), :],          # shape-only; wait is on the sem
            buf_ref.at[pl.ds(buf_base + j, 1), :],
            sem_ref.at[buf_base + j],
        ).wait()

    # Single unmasked, lane-dense output tile (big sequential writeback DMA).
    start = pl.multiple_of(buf_base, 8)
    out_ref[...] = buf_ref[pl.ds(start, block_n), :]


# ---------------------------------------------------------------------------
# Wrapper
# ---------------------------------------------------------------------------
def author_embedding(indices, table, *, onehot_max_rows=2048, force_hbm_path=False):
    """Pallas equivalent of nn.Embedding(author_dim, embed_dim)(indices)."""
    author_dim, embed_dim = table.shape
    itemsize = jnp.dtype(table.dtype).itemsize

    # Flatten + clamp ids (explicit bounds policy; see header comment).
    idx_flat = jnp.clip(indices.reshape(-1).astype(jnp.int32), 0, author_dim - 1)
    n = int(idx_flat.shape[0])

    # Keep the output lane-dense: pad embed_dim to a multiple of 128.
    embed_dim_pad = _round_up(embed_dim, 128)
    if embed_dim_pad != embed_dim:
        # TODO(synk): for very large HBM tables, DMA unpadded rows and pad in
        # VMEM instead of materializing a padded HBM copy of the table.
        table = jnp.pad(table, ((0, 0), (0, embed_dim_pad - embed_dim)))

    sub = {4: 8, 2: 16, 1: 32}.get(itemsize, 8)   # sublane tile for table dtype
    phys_vmem = _physical_vmem_bytes()
    table_bytes = author_dim * embed_dim_pad * itemsize

    # ---- resident one-hot path feasibility ---------------------------------
    block_n_res = _round_up(min(512, max(n, 1)), sub)
    out_tile_bytes = block_n_res * embed_dim_pad * itemsize
    onehot_bytes = block_n_res * author_dim * 4           # f32 one-hot intermediate
    acc_bytes = block_n_res * embed_dim_pad * 4           # f32 accumulator
    # Budget 2x the table: the pipeline may double-buffer even the
    # constant-index table block (matters on v7x's 64 MiB VMEM).
    resident_need = (2 * table_bytes + 2 * out_tile_bytes + onehot_bytes
                     + acc_bytes + (4 << 20))
    use_resident = (
        not force_hbm_path
        and jnp.issubdtype(table.dtype, jnp.floating)
        and itemsize in (2, 4)
        and author_dim <= onehot_max_rows
        and resident_need <= int(0.8 * phys_vmem)
    )

    if use_resident:
        n_pad = _round_up(max(n, 1), block_n_res)
        idx_p = idx_flat if n_pad == n else jnp.pad(idx_flat, (0, n_pad - n))
        idx_2d = idx_p.reshape(n_pad, 1)

        cost = pl.CostEstimate(
            flops=2 * n_pad * author_dim * embed_dim_pad,
            transcendentals=0,
            bytes_accessed=int(table_bytes + n_pad * embed_dim_pad * itemsize
                               + 4 * n_pad),
        )
        vmem_limit = min(int(0.9 * phys_vmem),
                         max(resident_need + (4 << 20), 32 << 20))

        out_flat = pl.pallas_call(
            functools.partial(_resident_onehot_kernel,
                              author_dim=author_dim,
                              highest=(table.dtype != jnp.bfloat16)),
            out_shape=jax.ShapeDtypeStruct((n_pad, embed_dim_pad), table.dtype),
            grid_spec=pltpu.PrefetchScalarGridSpec(
                num_scalar_prefetch=0,
                grid=(n_pad // block_n_res,),
                in_specs=[
                    pl.BlockSpec((block_n_res, 1), lambda i: (i, 0)),
                    # Whole table, constant block index -> kept in VMEM.
                    pl.BlockSpec((author_dim, embed_dim_pad), lambda i: (0, 0)),
                ],
                out_specs=pl.BlockSpec((block_n_res, embed_dim_pad),
                                       lambda i: (i, 0)),
            ),
            compiler_params=pltpu.CompilerParams(
                dimension_semantics=("parallel",),
                vmem_limit_bytes=int(vmem_limit),
            ),
            cost_estimate=cost,
        )(idx_2d, table)
    else:
        # Blocked, double-buffered manual DMA gather straight from HBM.
        bytes_per_row = max(embed_dim_pad * itemsize, 1)
        rows_budget = max(sub, (phys_vmem // 8) // bytes_per_row)
        block_n = min(128, max(n, 1), rows_budget)
        block_n = max(sub, (block_n // sub) * sub)
        n_pad = _round_up(max(n, 1), block_n)
        idx_p = idx_flat if n_pad == n else jnp.pad(idx_flat, (0, n_pad - n))

        dma_need = 4 * block_n * embed_dim_pad * itemsize + (4 << 20)
        vmem_limit = min(int(0.9 * phys_vmem), max(dma_need, 32 << 20))
        cost = pl.CostEstimate(
            flops=0, transcendentals=0,
            bytes_accessed=int(2 * n_pad * embed_dim_pad * itemsize + 4 * n_pad),
        )

        out_flat = pl.pallas_call(
            functools.partial(_dma_gather_kernel, block_n=block_n),
            out_shape=jax.ShapeDtypeStruct((n_pad, embed_dim_pad), table.dtype),
            grid_spec=pltpu.PrefetchScalarGridSpec(
                num_scalar_prefetch=1,
                grid=(n_pad // block_n,),
                in_specs=[pl.BlockSpec(memory_space=pl.ANY)],
                out_specs=pl.BlockSpec((block_n, embed_dim_pad),
                                       lambda i, idx: (i, 0)),
                scratch_shapes=[
                    pltpu.VMEM((2 * block_n, embed_dim_pad), table.dtype),
                    pltpu.SemaphoreType.DMA((2 * block_n,)),
                ],
            ),
            compiler_params=pltpu.CompilerParams(
                # Cross-step prefetch assumes sequential grid steps on one
                # core, so this axis must not be megacore-sharded.
                dimension_semantics=("arbitrary",),
                vmem_limit_bytes=int(vmem_limit),
            ),
            cost_estimate=cost,
        )(idx_p, table)

    out_flat = out_flat[:n, :embed_dim]
    return out_flat.reshape(tuple(indices.shape) + (embed_dim,))


if __name__ == "__main__":
    # Small config consistent with AuthorEmbedding(author_dim, embed_dim).
    author_dim = 64
    embed_dim = 128
    batch, seq = 2, 8

    key = jax.random.PRNGKey(0)
    k_table, k_idx = jax.random.split(key)

    # Deterministic parameter init (matches nn.Embedding's N(0,1) default).
    table = jax.random.normal(k_table, (author_dim, embed_dim), dtype=jnp.float32)
    indices = jax.random.randint(k_idx, (batch, seq), 0, author_dim, dtype=jnp.int32)

    ref = jnp.take(table, indices, axis=0)

    # Main path: VMEM-resident table, one-hot MXU gather (f32 / HIGHEST).
    out = jax.block_until_ready(author_embedding(indices, table))
    assert out.shape == (batch, seq, embed_dim), out.shape
    assert jnp.allclose(out, ref, rtol=1e-5, atol=1e-6), "resident path mismatch"

    # bf16 table exercises the bit-exact one-hot variant.
    table_bf16 = table.astype(jnp.bfloat16)
    ref_bf16 = jnp.take(table_bf16, indices, axis=0).astype(jnp.float32)
    out_bf16 = jax.block_until_ready(author_embedding(indices, table_bf16))
    assert jnp.allclose(out_bf16.astype(jnp.float32), ref_bf16,
                        rtol=1e-2, atol=1e-2), "bf16 resident path mismatch"

    # Forced fallback exercises the blocked, double-buffered HBM DMA gather.
    out_hbm = jax.block_until_ready(
        author_embedding(indices, table, force_hbm_path=True))
    assert jnp.allclose(out_hbm, ref), "dma path mismatch"

    print("KERNEL_OK")
</pallas_src>

<mosaic_0001>
module attributes {stable_mosaic.version = 11 : i64} {
  func.func @_resident_onehot_kernel(%arg0: i32, %arg1: memref<16x1xi32, #tpu.memory_space<vmem>>, %arg2: memref<64x128xf32, #tpu.memory_space<vmem>>, %arg3: memref<16x128xf32, #tpu.memory_space<vmem>>) attributes {dimension_semantics = [#tpu.dimension_semantics<parallel>], iteration_bounds = array<i64: 1>, scalar_prefetch = 0 : i64, scratch_operands = 0 : i64, tpu.core_type = #tpu.core_type<tc>, window_params = [{transform_indices = @transform_0, window_bounds = array<i64: 16, 1>}, {pipeline_mode = #tpu.pipeline_mode<synchronous>, transform_indices = @transform_1, window_bounds = array<i64: 64, 128>}, {transform_indices = @transform_2, window_bounds = array<i64: 16, 128>}]} {
    %c0 = arith.constant 0 : index
    %c0_0 = arith.constant 0 : index
    %0 = vector.load %arg1[%c0, %c0_0] : memref<16x1xi32, #tpu.memory_space<vmem>>, vector<16x1xi32>
    %c0_1 = arith.constant 0 : index
    %c0_2 = arith.constant 0 : index
    %1 = vector.load %arg2[%c0_1, %c0_2] : memref<64x128xf32, #tpu.memory_space<vmem>>, vector<64x128xf32>
    %2 = tpu.iota {dimensions = array<i32: 1>} : vector<16x64xi32>
    %3 = vector.broadcast %0 : vector<16x1xi32> to vector<16x64xi32>
    %4 = arith.cmpi eq, %2, %3 : vector<16x64xi32>
    %cst = arith.constant 1.000000e+00 : f32
    %cst_3 = arith.constant 0.000000e+00 : f32
    %5 = vector.broadcast %cst : f32 to vector<16x64xf32>
    %6 = vector.broadcast %cst_3 : f32 to vector<16x64xf32>
    %7 = arith.select %4, %5, %6 : vector<16x64xi1>, vector<16x64xf32>
    %cst_4 = arith.constant dense<0.000000e+00> : vector<16x128xf32>
    %8 = tpu.matmul %7, %1, %cst_4 {dimension_numbers = #tpu.dot_dimension_numbers<[1], [0], [0], [1], [0, 0, 1, 1], [], []>, precision = #tpu.contract_precision<fp32>} : vector<16x64xf32>, vector<64x128xf32>, vector<16x128xf32> -> vector<16x128xf32>
    %c0_5 = arith.constant 0 : index
    %c0_6 = arith.constant 0 : index
    %9 = vector.load %arg3[%c0_5, %c0_6] : memref<16x128xf32, #tpu.memory_space<vmem>>, vector<16x128xf32>
    tpu.vector_store %arg3[%c0_5, %c0_6], %8 {strides = array<i32>} : memref<16x128xf32, #tpu.memory_space<vmem>>, vector<16x128xf32>,
    return
  }
  func.func @transform_0(%arg0: i32) -> (i32, i32) {
    %c0_i32 = arith.constant 0 : i32
    %c0_i32_0 = arith.constant 0 : i32
    return %arg0, %c0_i32 : i32, i32
  }
  func.func @transform_1(%arg0: i32) -> (i32, i32) {
    %c0_i32 = arith.constant 0 : i32
    %c0_i32_0 = arith.constant 0 : i32
    %c0_i32_1 = arith.constant 0 : i32
    return %c0_i32, %c0_i32_0 : i32, i32
  }
  func.func @transform_2(%arg0: i32) -> (i32, i32) {
    %c0_i32 = arith.constant 0 : i32
    %c0_i32_0 = arith.constant 0 : i32
    return %arg0, %c0_i32 : i32, i32
  }
}

</mosaic_0001>

<bundles_post_ra>
// kernel: tpu_custom_call.1
= control target key start
LH: loop header
LB: loop body
LE: loop exit
PB: predicated region body
PF: predicated region fallthrough
CT: control target
= control target key end

     0   :  { %7 = vsyncpa [#allocation3], 0  ;;  %s1096_s0 = inlined_call_operand.vmem [shape: s32[16,1], index: 0, kind: input, shape index: {}]   ;;  %s1097_s1 = inlined_call_operand.hbm [shape: f32[64,128], index: 1, kind: input, shape index: {}]   ;;  %s1098_s2 = inlined_call_operand.hbm [shape: f32[16,128], index: 2, kind: output, shape index: {}]  }
   0x1   :  { %8 = vsyncpa [#allocation4], 0  ;;  %s995_s9 = smov [#allocation2]   ;;  %s947_s13 = scalar_lea.hbm %s1097_s1, 1024 }
   0x2   :  { %s16_s10 = sshll.u32 %s995_s9, 4  ;;  %p948_p0 = scmp.ne.s32.totalorder %s1097_s1, %s947_s13  ;;  %s17_s10 = int_to_ptr.vmem [resolvable:$true] %s16_s10 }
   0x3   :  { %p951_p1 = scmp.lt.u32.totalorder %s947_s13, %s1097_s1 }
   0x5   :  { %p953_p2 = pnand %p951_p1, %p948_p0 }
   0x7   :  { %956 = shalt.err (!%p953_p2)
}
   0x8   :  { %s957_s18 = scalar_lea.vmem %s17_s10, 1024  ;;  %p962_p4 = scmp.lt.s32.totalorder %s17_s10, %s17_s10 }
   0x9   :  { %p958_p3 = scmp.ne.s32.totalorder %s17_s10, %s957_s18  ;;  %p963_p5 = scmp.lt.s32.totalorder %s957_s18, %s957_s18 }
   0xb   :  { %p964_p6 = por %p963_p5, %p962_p4 }
   0xd   :  { %p965_p7 = pnand %p964_p6, %p958_p3 }
   0xf   :  { %968 = shalt.err (!%p965_p7)
}
  0x10   :  { %s996_s19 = smov 128   ;;  %s997_s20 = smov 8  }
  0x11   :  { %22 = dma.hbm_to_vmem [thread:$0]  %s1097_s1, 1024, %s17_s10, [#allocation3], %s996_s19, %s996_s19, %s997_s20  }
  0x12   :  { %991 = dma.done.wait [#allocation3], 1024  }
  0x13   :  { %992 = vsyncadd [#allocation3], 4294966272  ;;  %v998_v0 = vmov 0   ;;  %v26_v1 = vld [vmem:[%s1096_s0] sm:$0xff]  ;;  %v29_v3 = vld [vmem:[#allocation2 + $0x8] sm:$0xff]  ;;  %vm48_vm0 = vcmask 523264  }
  0x14   :  { %946 = vset.pattern.permute.xlu0 %v998_v0  ;;  %v28_v2 = vld [vmem:[#allocation2] sm:$0xff]  ;;  %v30_v5 = vld [vmem:[#allocation2 + $0x10] sm:$0xff]  ;;  %v31_v6 = vld [vmem:[#allocation2 + $0x18] sm:$0xff]  ;;  %v59_v8 = vand.u32 4294901760, %v29_v3 }
  0x15   :  { %39 = vperm.xlu0 %946, %v26_v1   ;;  %v56_v4 = vand.u32 4294901760, %v28_v2  ;;  %v27_v7 = vld [vmem:[%s1096_s0 + $0x8] sm:$0xff]  ;;  %v62_v9 = vand.u32 4294901760, %v30_v5  ;;  %v65_v10 = vand.u32 4294901760, %v31_v6  ;;  %v32_v11 = vld [vmem:[#allocation2 + $0x20] sm:$0xff]  ;;  %v34_v17 = vld [vmem:[#allocation2 + $0x30] sm:$0xff] }
  0x16   :  { %v33_v12 = vld [vmem:[#allocation2 + $0x28] sm:$0xff]  ;;  %v68_v15 = vand.u32 4294901760, %v32_v11  ;;  %v35_v18 = vld [vmem:[#allocation2 + $0x38] sm:$0xff]  ;;  %v157_v20 = vsub.f32 %v29_v3, %v59_v8  ;;  %v74_v21 = vand.u32 4294901760, %v34_v17  ;;  %v36_v3 = vlaneseq  ;;  %s1000_s0 = smov [#allocation5]  }
  0x17   :  { %v1037_v13 = vpack.c.bf16 %v59_v8, %v56_v4  ;;  %v1039_v14 = vpack.c.bf16 %v65_v10, %v62_v9  ;;  %v71_v16 = vand.u32 4294901760, %v33_v12  ;;  %v150_v19 = vsub.f32 %v28_v2, %v56_v4  ;;  %s642_s1 = sshll.u32 %s1000_s0, 4  ;;  %s643_s1 = int_to_ptr.vmem [resolvable:$true] %s642_s1 }
  0x18   :  { %v77_v22 = vand.u32 4294901760, %v35_v18  ;;  %v158_v24 = vand.u32 4294901760, %v157_v20  ;;  %v164_v28 = vsub.f32 %v30_v5, %v62_v9  ;;  %v171_v29 = vsub.f32 %v31_v6, %v65_v10  ;;  %s969_s27 = scalar_lea.vmem %s643_s1, 256  ;;  %p974_p9 = scmp.lt.s32.totalorder %s643_s1, %s643_s1 }
  0x19   :  { %42 = vperm.xlu0 %946, %v27_v7   ;;  %883 = vmatprep.subr.bf16.mxu0 %v1037_v13  ;;  %v151_v23 = vand.u32 4294901760, %v150_v19  ;;  %v1047_v25 = vpack.c.bf16 %v71_v16, %v68_v15  ;;  %v178_v38 = vsub.f32 %v32_v11, %v68_v15  ;;  %v185_v39 = vsub.f32 %v33_v12, %v71_v16  ;;  %p970_p8 = scmp.ne.s32.totalorder %s643_s1, %s969_s27  ;;  %p975_p10 = scmp.lt.s32.totalorder %s969_s27, %s969_s27 }
  0x1a   :  { %835 = vmatprep.subr.bf16.mxu1 %v1037_v13  ;;  %885 = vmatpush3.bf16.msra.mxu0 %v1037_v13  ;;  %v159_v27 = vsub.f32 %v157_v20, %v158_v24  ;;  %v1051_v30 = vpack.c.bf16 %v77_v22, %v74_v21  ;;  %v165_v33 = vand.u32 4294901760, %v164_v28  ;;  %v172_v34 = vand.u32 4294901760, %v171_v29 }
  0x1b   :  { %837 = vmatpush3.bf16.msra.mxu1 %v1037_v13  ;;  %887 = vmatprep.subr.bf16.mxu0 %v1039_v14  ;;  %v152_v26 = vsub.f32 %v150_v19, %v151_v23  ;;  %v898_v40 = vpack.c.bf16 %v158_v24, %v151_v23  ;;  %v179_v44 = vand.u32 4294901760, %v178_v38  ;;  %v186_v45 = vand.u32 4294901760, %v185_v39  ;;  %p976_p11 = por %p975_p10, %p974_p9 }
  0x1c   :  { %839 = vmatprep.subr.bf16.mxu1 %v1039_v14  ;;  %v160_v32 = vand.u32 4294901760, %v159_v27  ;;  %v1055_v35 = vpack.c.bf16 %v172_v34, %v165_v33  ;;  %v166_v36 = vsub.f32 %v164_v28, %v165_v33  ;;  %v173_v37 = vsub.f32 %v171_v29, %v172_v34 }
  0x1d   :  { %v153_v31 = vand.u32 4294901760, %v152_v26  ;;  %v192_v47 = vsub.f32 %v34_v17, %v74_v21  ;;  %v199_v48 = vsub.f32 %v35_v18, %v77_v22  ;;  %v906_v49 = vpack.c.bf16 %v186_v45, %v179_v44  ;;  %p977_p12 = pnand %p976_p11, %p970_p8 }
  0x1e   :  { %889 = vmatpush3.bf16.msra.mxu0 %v1039_v14  ;;  %v167_v42 = vand.u32 4294901760, %v166_v36  ;;  %v174_v43 = vand.u32 4294901760, %v173_v37  ;;  %v180_v50 = vsub.f32 %v178_v38, %v179_v44  ;;  %v187_v51 = vsub.f32 %v185_v39, %v186_v45 }
  0x1f   :  { %841 = vmatpush3.bf16.msra.mxu1 %v1039_v14  ;;  %891 = vmatprep.subr.bf16.mxu0 %v1047_v25  ;;  %v850_v41 = vpack.c.bf16 %v160_v32, %v153_v31  ;;  %v193_v52 = vand.u32 4294901760, %v192_v47  ;;  %v200_v53 = vand.u32 4294901760, %v199_v48  ;;  %v866_v63 = vpack.c.bf16 %v157_v20, %v150_v19 }
  0x20   :  { %843 = vmatprep.subr.bf16.mxu1 %v1047_v25  ;;  %v854_v46 = vpack.c.bf16 %v174_v43, %v167_v42  ;;  %v181_v54 = vand.u32 4294901760, %v180_v50  ;;  %v188_v55 = vand.u32 4294901760, %v187_v51  ;;  %v870_v0 = vpack.c.bf16 %v171_v29, %v164_v28 }
  0x21   :  { %v910_v56 = vpack.c.bf16 %v200_v53, %v193_v52  ;;  %v194_v57 = vsub.f32 %v192_v47, %v193_v52  ;;  %v201_v58 = vsub.f32 %v199_v48, %v200_v53  ;;  %v874_v1 = vpack.c.bf16 %v185_v39, %v178_v38 }
  0x22   :  { %893 = vmatpush3.bf16.msra.mxu0 %v1047_v25  ;;  %v858_v59 = vpack.c.bf16 %v188_v55, %v181_v54  ;;  %v878_v2 = vpack.c.bf16 %v199_v48, %v192_v47  ;;  %v37_v4 = vand.u32 127, %v36_v3  ;;  %v999_v6 = vmov 0.0  }
  0x23   :  { %845 = vmatpush3.bf16.msra.mxu1 %v1047_v25  ;;  %895 = vmatprep.subr.bf16.mxu0 %v1051_v30  ;;  %v195_v60 = vand.u32 4294901760, %v194_v57  ;;  %v202_v61 = vand.u32 4294901760, %v201_v58 }
  0x24   :  { %847 = vmatprep.subr.bf16.mxu1 %v1051_v30 }
  0x25   :  { %v862_v62 = vpack.c.bf16 %v202_v61, %v195_v60 }
  0x26   :  { %897 = vmatpush3.bf16.msra.mxu0 %v1051_v30 }
  0x27   :  { %849 = vmatpush3.bf16.msra.mxu1 %v1051_v30  ;;  %899 = vmatprep.subr.bf16.mxu0 %v898_v40 }
  0x28   :  { %851 = vmatprep.subr.bf16.mxu1 %v850_v41 }
  0x94   :  { %v40_v5 = vpop.permute.xlu0 %39 }
  0x95   :  { %vm44_vm1 = vcmp.eq.s32.totalorder %v37_v4, %v40_v5 }
  0x96   :  { %v46_v7 = vsel %vm44_vm1, 1.0, %v999_v6 }
  0x97   :  { %v50_v8 = vsel %vm48_vm0, %v46_v7, 0 }
  0x98   :  { %v129_v9 = vsub.f32 %v50_v8, %v50_v8  ;;  %v43_v10 = vpop.permute.xlu0 %42 }
  0x99   :  { %vm45_vm2 = vcmp.eq.s32.totalorder %v37_v4, %v43_v10 }
  0x9a   :  { %v47_v11 = vsel %vm45_vm2, 1.0, %v999_v6  ;;  %v130_v12 = vand.u32 4294901760, %v129_v9 }
  0x9b   :  { %v53_v15 = vsel %vm48_vm0, %v47_v11, 0 }
  0x9c   :  { %v139_v16 = vsub.f32 %v53_v15, %v53_v15  ;;  %793 = vmatprep.mubr.f32.mxu0 %v130_v12  ;;  %v131_v17 = vsub.f32 %v129_v9, %v130_v12 }
  0x9e   :  { %v132_v18 = vand.u32 4294901760, %v131_v17  ;;  %v140_v19 = vand.u32 4294901760, %v139_v16 }
  0xa0   :  { %736 = vmatprep.mubr.f32.mxu1 %v132_v18  ;;  %794 = vmatmul.mubr.f32.vlgmr.msra.gmra.mrb[0].mxu0 %v140_v19  ;;  %v141_v20 = vsub.f32 %v139_v16, %v140_v19 }
  0xa1   :  { %901 = vmatpush3.bf16.msra.mxu0 %v898_v40  ;;  %812 = vmatprep.mubr.msk.f32.mxu0 %vm48_vm0, %v46_v7 }
  0xa2   :  { %903 = vmatprep.subr.bf16.mxu0 %v1055_v35  ;;  %v142_v21 = vand.u32 4294901760, %v141_v20 }
  0xa4   :  { %737 = vmatmul.mubr.f32.vlgmr.msra.gmra.mrb[0].mxu1 %v142_v21 }
  0xa5   :  { %853 = vmatpush3.bf16.msra.mxu1 %v850_v41  ;;  %905 = vmatpush3.bf16.msra.mxu0 %v1055_v35 }
  0xa6   :  { %755 = vmatprep.mubr.msk.f32.mxu1 %vm48_vm0, %v46_v7  ;;  %855 = vmatprep.subr.bf16.mxu1 %v854_v46 }
  0xa7   :  { %907 = vmatprep.subr.bf16.mxu0 %v906_v49 }
  0xa9   :  { %857 = vmatpush3.bf16.msra.mxu1 %v854_v46  ;;  %909 = vmatpush3.bf16.msra.mxu0 %v906_v49 }
  0xaa   :  { %859 = vmatprep.subr.bf16.mxu1 %v858_v59  ;;  %911 = vmatprep.subr.bf16.mxu0 %v910_v56 }
  0xad   :  { %861 = vmatpush3.bf16.msra.mxu1 %v858_v59  ;;  %913 = vmatpush3.bf16.msra.mxu0 %v910_v56 }
  0xae   :  { %863 = vmatprep.subr.bf16.mxu1 %v862_v62  ;;  %915 = vmatprep.subr.bf16.mxu0 %v1037_v13 }
  0xb0   :  { %813 = vmatmul.mubr.msk.f32.vlgmr.msra.gmra.mrb[0].mxu0 %vm48_vm0, %v47_v11 }
  0xb1   :  { %865 = vmatpush3.bf16.msra.mxu1 %v862_v62  ;;  %917 = vmatpush3.bf16.msra.mxu0 %v1037_v13 }
  0xb2   :  { %831 = vmatprep.mubr.msk.f32.mxu0 %vm48_vm0, %v46_v7  ;;  %867 = vmatprep.subr.bf16.mxu1 %v866_v63 }
  0xb3   :  { %919 = vmatprep.subr.bf16.mxu0 %v1039_v14 }
  0xb4   :  { %756 = vmatmul.mubr.msk.f32.vlgmr.msra.gmra.mrb[0].mxu1 %vm48_vm0, %v47_v11 }
  0xb5   :  { %869 = vmatpush3.bf16.msra.mxu1 %v866_v63  ;;  %774 = vmatprep.mubr.f32.mxu1 %v129_v9 }
  0xb6   :  { %921 = vmatpush3.bf16.msra.mxu0 %v1039_v14  ;;  %871 = vmatprep.subr.bf16.mxu1 %v870_v0 }
  0xb7   :  { %923 = vmatprep.subr.bf16.mxu0 %v1047_v25 }
  0xb9   :  { %873 = vmatpush3.bf16.msra.mxu1 %v870_v0 }
  0xba   :  { %925 = vmatpush3.bf16.msra.mxu0 %v1047_v25  ;;  %875 = vmatprep.subr.bf16.mxu1 %v874_v1 }
  0xbb   :  { %927 = vmatprep.subr.bf16.mxu0 %v1051_v30 }
  0xbd   :  { %877 = vmatpush3.bf16.msra.mxu1 %v874_v1 }
  0xbe   :  { %929 = vmatpush3.bf16.msra.mxu0 %v1051_v30  ;;  %879 = vmatprep.subr.bf16.mxu1 %v878_v2 }
  0xc1   :  { %832 = vmatmul.mubr.msk.f32.vlgmr.msra.gmra.mrb[0].mxu0 %vm48_vm0, %v47_v11  ;;  %881 = vmatpush3.bf16.msra.mxu1 %v878_v2 }
  0xc4   :  { %775 = vmatmul.mubr.f32.vlgmr.msra.gmra.mrb[0].mxu1 %v139_v16 }
 0x194   :  { %v833_v13 = vpop.f32.mrb[0].mxu0 }
 0x195   :  { %v625_v22 = vpop.f32.mrb[1].mxu0 }
 0x197   :  { %v776_v14 = vpop.f32.mrb[0].mxu1 }
 0x198   :  { %v930_v23 = vadd.f32 %v833_v13, %v776_v14  ;;  %v349_v24 = vpop.f32.mrb[1].mxu1 }
 0x199   :  { %v931_v26 = vadd.f32 %v625_v22, %v349_v24 }
 0x19a   :  { %636 = vst [vmem:[#allocation5 + $0x8] sm:$0xff] %v930_v23 }
 0x19b   :  { %635 = vst [vmem:[#allocation5] sm:$0xff] %v931_v26 }
 0x19c   :  { %980 = shalt.err (!%p977_p12)
}
 0x19d   :  { %s981_s30 = scalar_lea.hbm %s1098_s2, 256 }
 0x19e   :  { %p982_p13 = scmp.ne.s32.totalorder %s1098_s2, %s981_s30  ;;  %p985_p0 = scmp.lt.u32.totalorder %s981_s30, %s1098_s2 }
 0x1a0   :  { %p987_p1 = pnand %p985_p0, %p982_p13 }
 0x1a2   :  { %990 = shalt.err (!%p987_p1)
}
 0x1a3   :  { %648 = dma.vmem_to_hbm [thread:$0]  %s643_s1, 256, %s1098_s2, [#allocation4], %s996_s19, %s996_s19, %s997_s20  }
 0x1a4   :  { %993 = dma.done.wait [#allocation4], 256  }
 0x1a5   :  { %994 = vsyncadd [#allocation4], 4294967040 }
 0x1a6   :  { %652 = vsyncpa [#allocation3], 1 }
 0x1a7   :  { %653 = vsyncpa [#allocation4], 1 }

</bundles_post_ra>
